<compile_context>
chip_gen: v6e
topology: v6e:2x2x1
jax: 0.10.0
libtpu: 0.0.40
codegen_flags: <defaults>
</compile_context>

<pallas_src>
import numpy as np
import jax
import jax.numpy as jnp
from jax.experimental import pallas as pl
from jax.experimental.pallas import tpu as pltpu


# ----------------------------------------------------------------------------
# Parameter construction (glue, plain JAX): quaternion Hamilton weight assembly
# ----------------------------------------------------------------------------
def quaternion_weight_1x1(key, in_ch, out_ch):
    """(out_ch, in_ch) effective weight of a 1x1 QuaternionConv (Parcollet layout)."""
    assert in_ch % 4 == 0 and out_ch % 4 == 0
    oq, iq = out_ch // 4, in_ch // 4
    kr, ki, kj, kk = jax.random.split(key, 4)
    scale = 1.0 / np.sqrt(2.0 * in_ch)
    r = jax.random.uniform(kr, (oq, iq), jnp.float32, -scale, scale)
    i = jax.random.uniform(ki, (oq, iq), jnp.float32, -scale, scale)
    j = jax.random.uniform(kj, (oq, iq), jnp.float32, -scale, scale)
    k = jax.random.uniform(kk, (oq, iq), jnp.float32, -scale, scale)
    row_r = jnp.concatenate([r, -i, -j, -k], axis=1)
    row_i = jnp.concatenate([i,  r, -k,  j], axis=1)
    row_j = jnp.concatenate([j,  k,  r, -i], axis=1)
    row_k = jnp.concatenate([k, -j,  i,  r], axis=1)
    return jnp.concatenate([row_r, row_i, row_j, row_k], axis=0)


def _conv3x3_source_masks(H, W):
    """(9, H*W) f32 validity masks for the 3x3 taps, pre-rolled to source side.

    For tap k with spatial shift s_k = dy*W + dx, the kernel computes
      contribution[i] = (taps_k * S_k)[(i + s_k) mod HW]
    so S_k must satisfy S_k[j] = dest_valid_k[(j - s_k) mod HW]. Because S_k
    only depends on (j mod HW), tiling it Nb times keeps the same guarantee for
    lane-flattened (Nb*HW) planes: any roll that crosses a plane boundary
    (including the global wrap) reads a masked source."""
    HW = H * W
    idx = np.arange(HW)
    hh, ww = idx // W, idx % W
    S = np.zeros((9, HW), np.float32)
    for ky in range(3):
        for kx in range(3):
            dy, dx = ky - 1, kx - 1
            k = ky * 3 + kx
            shift = dy * W + dx
            dest_valid = ((hh + dy >= 0) & (hh + dy < H) &
                          (ww + dx >= 0) & (ww + dx < W)).astype(np.float32)
            S[k] = np.roll(dest_valid, shift)
    return S


def _pick_block_batch(N, per_batch_bytes, target_bytes=2 << 20):
    """Largest divisor of N whose per-step activation DMA stays <= ~2 MiB, while
    keeping >= 2 grid steps when N >= 2 (so both v7x TensorCores get work)."""
    nb = 1
    for d in range(1, N + 1):
        if N % d == 0 and d * per_batch_bytes <= target_bytes:
            nb = d
    if N >= 2 and N // nb < 2:
        smaller = [d for d in range(1, N) if N % d == 0 and N // d >= 2]
        if smaller:
            nb = max(smaller)
    return nb


# ----------------------------------------------------------------------------
# Pallas kernel: whole forward pass for Nb batch elements, (C, Nb*HW) layout
# ----------------------------------------------------------------------------
def make_attention_kernel(H, W, Nb):
    HW = H * W

    def kernel(g_ref, x_ref, wg_ref, wx_ref, wc_ref, m_ref, b_ref, o_ref):
        # Flatten the Nb sub-batch onto the 128-wide lane axis -> (C, Nb*HW).
        if Nb > 1:
            g = jnp.concatenate([g_ref[n] for n in range(Nb)], axis=1)
            x = jnp.concatenate([x_ref[n] for n in range(Nb)], axis=1)
        else:
            g, x = g_ref[0], x_ref[0]

        # 1x1 quaternion convs == channel matmuls (bf16 MXU, f32 accumulate) + ReLU.
        net = jnp.maximum(
            jnp.dot(wg_ref[...], g, preferred_element_type=jnp.float32)
            + jnp.dot(wx_ref[...], x, preferred_element_type=jnp.float32),
            0.0)                                              # (Cout, L) f32

        # Folded (1x1 conv -> 4ch) o (3x3 channel mix): 9 tap planes, then zero
        # every source whose 3x3 destination would fall outside the image.
        taps = jnp.dot(wc_ref[...], net.astype(wc_ref.dtype),
                       preferred_element_type=jnp.float32)    # (9, L) f32
        taps = taps * m_ref[...]                              # bf16 mask promotes

        # 3x3 spatial gather as 4 grouped lane-rolls instead of 9 single-row ones:
        #   rows 0:3 -> ky=0 (needs +W), 3:6 -> ky=1, 6:9 -> ky=2 (needs -W)
        ty = (jnp.roll(taps[0:3], W, axis=1) + taps[3:6]
              + jnp.roll(taps[6:9], -W, axis=1))              # (3, L), row = kx
        acc = (jnp.roll(ty[0:1], 1, axis=1) + ty[1:2]
               + jnp.roll(ty[2:3], -1, axis=1)) + b_ref[0, 0]  # (1, L)
        # TODO(synk): for HW >> 8K keep acc/att sublane-dense ((8, L/8)) to cut
        # vreg pressure; at these sizes the (1, L) chain is noise.

        att = jax.nn.sigmoid(acc)                             # (1, L) f32

        # Gate x per batch element: lane-dense stores, broadcast over channels.
        for n in range(Nb):
            o_ref[n] = (att[:, n * HW:(n + 1) * HW] * x_ref[n]).astype(o_ref.dtype)

    return kernel


# ----------------------------------------------------------------------------
# Wrapper: layout plumbing (free reshapes), weight folding + pallas_call
# ----------------------------------------------------------------------------
def q_attention_1conv(g_nchw, x_nchw, Wg, Wx, Wq, Wlast, blast,
                      act_dtype=jnp.bfloat16):
    N, Cg, H, Wsp = g_nchw.shape
    _, Cx, _, _ = x_nchw.shape
    Cout = Wg.shape[0]
    HW = H * Wsp
    out_dtype = x_nchw.dtype   # keep the module's dtype; pass bf16 inputs to also
                               # halve the output-store traffic.

    # NCHW -> (N, C, HW): contiguous reshape (no transpose); bf16 halves HBM reads.
    g_m = g_nchw.reshape(N, Cg, HW).astype(act_dtype)
    x_m = x_nchw.reshape(N, Cx, HW).astype(act_dtype)

    # Fold conv(ch_out -> 4) and the 3x3 conv's channel contraction into one
    # (9, Cout) weight (tiny one-time fold, kept exact in f32).
    wl_flat = Wlast[0].reshape(4, 9).T                                   # (9, 4)
    w_comb = jnp.dot(wl_flat, Wq, precision=jax.lax.Precision.HIGHEST)   # (9, Cout)
    wg_k = Wg.astype(act_dtype)
    wx_k = Wx.astype(act_dtype)
    wc_k = w_comb.astype(act_dtype)
    b_k = blast.reshape(1, 1).astype(jnp.float32)

    # Batch-block the grid so each step's activation DMA is as large as sensible.
    act_bytes = jnp.dtype(act_dtype).itemsize
    out_bytes = jnp.dtype(out_dtype).itemsize
    per_batch_bytes = (Cg + Cx) * HW * act_bytes + Cx * HW * out_bytes
    Nb = _pick_block_batch(N, per_batch_bytes)
    L = Nb * HW

    # 3x3 boundary masks (source side, pre-rolled), bf16 (0/1 exact), tiled for Nb.
    masks = np.tile(_conv3x3_source_masks(H, Wsp), (1, Nb))
    masks = jnp.asarray(masks, dtype=jnp.bfloat16)                        # (9, L)

    kernel = make_attention_kernel(H, Wsp, Nb)

    # Rough VMEM budget: double-buffered activation/out blocks + resident weights
    # + in-kernel f32 intermediates, with 2x headroom, clamped to [32, 64] MiB.
    vmem_need = (2 * Nb * per_batch_bytes
                 + (Cg + Cx) * L * act_bytes
                 + (Cout + 9 * 2 + 4) * L * 4
                 + (Cout * (Cg + Cx) + 9 * Cout) * act_bytes
                 + 9 * L * 2)
    vmem_limit = int(min(64 * 1024 * 1024, max(32 * 1024 * 1024, 2 * vmem_need)))
    # TODO(synk): for large H*W on v7x (64 MiB VMEM), add a halo'd HW-tiling grid
    # axis (masks/rolls re-derived per tile) instead of whole-plane blocks.

    out = pl.pallas_call(
        kernel,
        out_shape=jax.ShapeDtypeStruct((N, Cx, HW), out_dtype),
        grid=(N // Nb,),
        in_specs=[
            pl.BlockSpec((Nb, Cg, HW), lambda b: (b, 0, 0)),
            pl.BlockSpec((Nb, Cx, HW), lambda b: (b, 0, 0)),
            pl.BlockSpec((Cout, Cg), lambda b: (0, 0)),
            pl.BlockSpec((Cout, Cx), lambda b: (0, 0)),
            pl.BlockSpec((9, Cout), lambda b: (0, 0)),
            pl.BlockSpec((9, L), lambda b: (0, 0)),
            pl.BlockSpec((1, 1), lambda b: (0, 0),
                         memory_space=pltpu.MemorySpace.SMEM),
        ],
        out_specs=pl.BlockSpec((Nb, Cx, HW), lambda b: (b, 0, 0)),
        compiler_params=pltpu.CompilerParams(
            dimension_semantics=("parallel",),
            vmem_limit_bytes=vmem_limit,
        ),
    )(g_m, x_m, wg_k, wx_k, wc_k, masks, b_k)

    # (N, Cx, HW) -> NCHW (free reshape)
    return out.reshape(N, Cx, H, Wsp)


# ----------------------------------------------------------------------------
# Pure-JAX reference (for correctness check only)
# ----------------------------------------------------------------------------
def ref_forward(g, x, Wg, Wx, Wq, Wlast, blast):
    g1 = jnp.einsum('nihw,oi->nohw', g, Wg)
    x1 = jnp.einsum('nihw,oi->nohw', x, Wx)
    net = jax.nn.relu(g1 + x1)
    net = jnp.einsum('nihw,oi->nohw', net, Wq)
    net = jax.lax.conv_general_dilated(
        net, Wlast, window_strides=(1, 1), padding=((1, 1), (1, 1)),
        dimension_numbers=('NCHW', 'OIHW', 'NCHW'))
    net = net + blast.reshape(1, 1, 1, 1)
    net = jax.nn.sigmoid(net)
    return net * x


if __name__ == "__main__":
    key = jax.random.PRNGKey(0)
    k_g, k_x, k_wg, k_wx, k_wq, k_wl, k_bl = jax.random.split(key, 7)

    # small shapes consistent with the module (channels divisible by 4);
    # N=4 exercises batch blocking (Nb=2, grid of 2 parallel steps).
    N, H, Wsp = 4, 16, 16
    ch_ing, ch_inx, ch_out = 8, 8, 16

    g = jax.random.normal(k_g, (N, ch_ing, H, Wsp), jnp.float32)
    x = jax.random.normal(k_x, (N, ch_inx, H, Wsp), jnp.float32)

    Wg = quaternion_weight_1x1(k_wg, ch_ing, ch_out)        # convg
    Wx = quaternion_weight_1x1(k_wx, ch_inx, ch_out)        # convx
    Wq = quaternion_weight_1x1(k_wq, ch_out, 4)             # conv (ch_out -> 4)
    s = 1.0 / np.sqrt(4 * 9)
    Wlast = jax.random.uniform(k_wl, (1, 4, 3, 3), jnp.float32, -s, s)  # conv_last
    blast = jax.random.uniform(k_bl, (1,), jnp.float32, -s, s)

    out = jax.block_until_ready(q_attention_1conv(g, x, Wg, Wx, Wq, Wlast, blast))

    # f32 reference; tolerance accounts for bf16 activations/weights on the MXU path.
    ref = jax.block_until_ready(ref_forward(g, x, Wg, Wx, Wq, Wlast, blast))
    np.testing.assert_allclose(np.asarray(out), np.asarray(ref), rtol=3e-2, atol=3e-2)

    print("KERNEL_OK")
</pallas_src>

<mosaic_0001>
module attributes {stable_mosaic.version = 11 : i64} {
  func.func @kernel(%arg0: i32, %arg1: memref<2x8x256xbf16, #tpu.memory_space<vmem>>, %arg2: memref<2x8x256xbf16, #tpu.memory_space<vmem>>, %arg3: memref<16x8xbf16, #tpu.memory_space<vmem>>, %arg4: memref<16x8xbf16, #tpu.memory_space<vmem>>, %arg5: memref<9x16xbf16, #tpu.memory_space<vmem>>, %arg6: memref<9x512xbf16, #tpu.memory_space<vmem>>, %arg7: memref<1x1xf32, #tpu.memory_space<smem>>, %arg8: memref<2x8x256xf32, #tpu.memory_space<vmem>>) attributes {dimension_semantics = [#tpu.dimension_semantics<parallel>], iteration_bounds = array<i64: 2>, scalar_prefetch = 0 : i64, scratch_operands = 0 : i64, tpu.core_type = #tpu.core_type<tc>, window_params = [{transform_indices = @transform_0, window_bounds = array<i64: 2, 8, 256>}, {transform_indices = @transform_1, window_bounds = array<i64: 2, 8, 256>}, {pipeline_mode = #tpu.pipeline_mode<synchronous>, transform_indices = @transform_2, window_bounds = array<i64: 16, 8>}, {pipeline_mode = #tpu.pipeline_mode<synchronous>, transform_indices = @transform_3, window_bounds = array<i64: 16, 8>}, {pipeline_mode = #tpu.pipeline_mode<synchronous>, transform_indices = @transform_4, window_bounds = array<i64: 9, 16>}, {pipeline_mode = #tpu.pipeline_mode<synchronous>, transform_indices = @transform_5, window_bounds = array<i64: 9, 512>}, {transform_indices = @transform_6, window_bounds = array<i64: 1, 1>}, {transform_indices = @transform_7, window_bounds = array<i64: 2, 8, 256>}]} {
    %c0 = arith.constant 0 : index
    %c0_0 = arith.constant 0 : index
    %c0_1 = arith.constant 0 : index
    %0 = vector.load %arg1[%c0, %c0_0, %c0_1] : memref<2x8x256xbf16, #tpu.memory_space<vmem>>, vector<1x8x256xbf16>
    %1 = vector.shape_cast %0 : vector<1x8x256xbf16> to vector<8x256xbf16>
    %c1 = arith.constant 1 : index
    %c0_2 = arith.constant 0 : index
    %c0_3 = arith.constant 0 : index
    %2 = vector.load %arg1[%c1, %c0_2, %c0_3] : memref<2x8x256xbf16, #tpu.memory_space<vmem>>, vector<1x8x256xbf16>
    %3 = vector.shape_cast %2 : vector<1x8x256xbf16> to vector<8x256xbf16>
    %4 = tpu.concatenate %1, %3 in 1 : vector<8x256xbf16>, vector<8x256xbf16> -> vector<8x512xbf16>
    %c0_4 = arith.constant 0 : index
    %c0_5 = arith.constant 0 : index
    %c0_6 = arith.constant 0 : index
    %5 = vector.load %arg2[%c0_4, %c0_5, %c0_6] : memref<2x8x256xbf16, #tpu.memory_space<vmem>>, vector<1x8x256xbf16>
    %6 = vector.shape_cast %5 : vector<1x8x256xbf16> to vector<8x256xbf16>
    %c1_7 = arith.constant 1 : index
    %c0_8 = arith.constant 0 : index
    %c0_9 = arith.constant 0 : index
    %7 = vector.load %arg2[%c1_7, %c0_8, %c0_9] : memref<2x8x256xbf16, #tpu.memory_space<vmem>>, vector<1x8x256xbf16>
    %8 = vector.shape_cast %7 : vector<1x8x256xbf16> to vector<8x256xbf16>
    %9 = tpu.concatenate %6, %8 in 1 : vector<8x256xbf16>, vector<8x256xbf16> -> vector<8x512xbf16>
    %c0_10 = arith.constant 0 : index
    %c0_11 = arith.constant 0 : index
    %10 = vector.load %arg3[%c0_10, %c0_11] : memref<16x8xbf16, #tpu.memory_space<vmem>>, vector<16x8xbf16>
    %cst = arith.constant dense<0.000000e+00> : vector<16x512xf32>
    %11 = tpu.matmul %10, %4, %cst {dimension_numbers = #tpu.dot_dimension_numbers<[1], [0], [0], [1], [0, 0, 1, 1], [], []>} : vector<16x8xbf16>, vector<8x512xbf16>, vector<16x512xf32> -> vector<16x512xf32>
    %c0_12 = arith.constant 0 : index
    %c0_13 = arith.constant 0 : index
    %12 = vector.load %arg4[%c0_12, %c0_13] : memref<16x8xbf16, #tpu.memory_space<vmem>>, vector<16x8xbf16>
    %cst_14 = arith.constant dense<0.000000e+00> : vector<16x512xf32>
    %13 = tpu.matmul %12, %9, %cst_14 {dimension_numbers = #tpu.dot_dimension_numbers<[1], [0], [0], [1], [0, 0, 1, 1], [], []>} : vector<16x8xbf16>, vector<8x512xbf16>, vector<16x512xf32> -> vector<16x512xf32>
    %14 = arith.addf %11, %13 : vector<16x512xf32>
    %cst_15 = arith.constant 0.000000e+00 : f32
    %15 = vector.broadcast %cst_15 : f32 to vector<16x512xf32>
    %16 = arith.maximumf %14, %15 : vector<16x512xf32>
    %c0_16 = arith.constant 0 : index
    %c0_17 = arith.constant 0 : index
    %17 = vector.load %arg5[%c0_16, %c0_17] : memref<9x16xbf16, #tpu.memory_space<vmem>>, vector<9x16xbf16>
    %18 = arith.truncf %16 : vector<16x512xf32> to vector<16x512xbf16>
    %cst_18 = arith.constant dense<0.000000e+00> : vector<9x512xf32>
    %19 = tpu.matmul %17, %18, %cst_18 {dimension_numbers = #tpu.dot_dimension_numbers<[1], [0], [0], [1], [0, 0, 1, 1], [], []>} : vector<9x16xbf16>, vector<16x512xbf16>, vector<9x512xf32> -> vector<9x512xf32>
    %c0_19 = arith.constant 0 : index
    %c0_20 = arith.constant 0 : index
    %20 = vector.load %arg6[%c0_19, %c0_20] : memref<9x512xbf16, #tpu.memory_space<vmem>>, vector<9x512xbf16>
    %21 = arith.extf %20 : vector<9x512xbf16> to vector<9x512xf32>
    %22 = arith.mulf %19, %21 : vector<9x512xf32>
    %23 = vector.extract_strided_slice %22 {offsets = [0, 0], sizes = [3, 512], strides = [1, 1]} : vector<9x512xf32> to vector<3x512xf32>
    %24 = vector.extract_strided_slice %23 {offsets = [0, 496], sizes = [3, 16], strides = [1, 1]} : vector<3x512xf32> to vector<3x16xf32>
    %25 = vector.extract_strided_slice %23 {offsets = [0, 0], sizes = [3, 496], strides = [1, 1]} : vector<3x512xf32> to vector<3x496xf32>
    %26 = tpu.concatenate %24, %25 in 1 : vector<3x16xf32>, vector<3x496xf32> -> vector<3x512xf32>
    %27 = vector.extract_strided_slice %22 {offsets = [3, 0], sizes = [3, 512], strides = [1, 1]} : vector<9x512xf32> to vector<3x512xf32>
    %28 = arith.addf %26, %27 : vector<3x512xf32>
    %29 = vector.extract_strided_slice %22 {offsets = [6, 0], sizes = [3, 512], strides = [1, 1]} : vector<9x512xf32> to vector<3x512xf32>
    %30 = vector.extract_strided_slice %29 {offsets = [0, 16], sizes = [3, 496], strides = [1, 1]} : vector<3x512xf32> to vector<3x496xf32>
    %31 = vector.extract_strided_slice %29 {offsets = [0, 0], sizes = [3, 16], strides = [1, 1]} : vector<3x512xf32> to vector<3x16xf32>
    %32 = tpu.concatenate %30, %31 in 1 : vector<3x496xf32>, vector<3x16xf32> -> vector<3x512xf32>
    %33 = arith.addf %28, %32 : vector<3x512xf32>
    %34 = vector.extract_strided_slice %33 {offsets = [0, 0], sizes = [1, 512], strides = [1, 1]} : vector<3x512xf32> to vector<1x512xf32>
    %35 = vector.extract_strided_slice %34 {offsets = [0, 511], sizes = [1, 1], strides = [1, 1]} : vector<1x512xf32> to vector<1x1xf32>
    %36 = vector.extract_strided_slice %34 {offsets = [0, 0], sizes = [1, 511], strides = [1, 1]} : vector<1x512xf32> to vector<1x511xf32>
    %37 = tpu.concatenate %35, %36 in 1 : vector<1x1xf32>, vector<1x511xf32> -> vector<1x512xf32>
    %38 = vector.extract_strided_slice %33 {offsets = [1, 0], sizes = [1, 512], strides = [1, 1]} : vector<3x512xf32> to vector<1x512xf32>
    %39 = arith.addf %37, %38 : vector<1x512xf32>
    %40 = vector.extract_strided_slice %33 {offsets = [2, 0], sizes = [1, 512], strides = [1, 1]} : vector<3x512xf32> to vector<1x512xf32>
    %41 = vector.extract_strided_slice %40 {offsets = [0, 1], sizes = [1, 511], strides = [1, 1]} : vector<1x512xf32> to vector<1x511xf32>
    %42 = vector.extract_strided_slice %40 {offsets = [0, 0], sizes = [1, 1], strides = [1, 1]} : vector<1x512xf32> to vector<1x1xf32>
    %43 = tpu.concatenate %41, %42 in 1 : vector<1x511xf32>, vector<1x1xf32> -> vector<1x512xf32>
    %44 = arith.addf %39, %43 : vector<1x512xf32>
    %c0_21 = arith.constant 0 : index
    %c0_22 = arith.constant 0 : index
    %45 = memref.load %arg7[%c0_21, %c0_22] : memref<1x1xf32, #tpu.memory_space<smem>>
    %46 = vector.broadcast %45 : f32 to vector<1x512xf32>
    %47 = arith.addf %44, %46 : vector<1x512xf32>
    %48 = arith.negf %47 : vector<1x512xf32>
    %49 = math.exp %48 : vector<1x512xf32>
    %cst_23 = arith.constant 1.000000e+00 : f32
    %50 = vector.broadcast %cst_23 : f32 to vector<1x512xf32>
    %51 = arith.addf %50, %49 : vector<1x512xf32>
    %52 = arith.divf %50, %51 : vector<1x512xf32>
    %53 = vector.extract_strided_slice %52 {offsets = [0, 0], sizes = [1, 256], strides = [1, 1]} : vector<1x512xf32> to vector<1x256xf32>
    %c0_24 = arith.constant 0 : index
    %c0_25 = arith.constant 0 : index
    %c0_26 = arith.constant 0 : index
    %54 = vector.load %arg2[%c0_24, %c0_25, %c0_26] : memref<2x8x256xbf16, #tpu.memory_space<vmem>>, vector<1x8x256xbf16>
    %55 = vector.shape_cast %54 : vector<1x8x256xbf16> to vector<8x256xbf16>
    %56 = arith.extf %55 : vector<8x256xbf16> to vector<8x256xf32>
    %57 = vector.broadcast %53 : vector<1x256xf32> to vector<8x256xf32>
    %58 = arith.mulf %57, %56 : vector<8x256xf32>
    %c0_27 = arith.constant 0 : index
    %c0_28 = arith.constant 0 : index
    %c0_29 = arith.constant 0 : index
    %59 = vector.load %arg8[%c0_27, %c0_28, %c0_29] : memref<2x8x256xf32, #tpu.memory_space<vmem>>, vector<1x8x256xf32>
    %60 = vector.shape_cast %59 : vector<1x8x256xf32> to vector<8x256xf32>
    %61 = vector.shape_cast %58 : vector<8x256xf32> to vector<1x8x256xf32>
    tpu.vector_store %arg8[%c0_27, %c0_28, %c0_29], %61 {strides = array<i32>} : memref<2x8x256xf32, #tpu.memory_space<vmem>>, vector<1x8x256xf32>,
    %62 = vector.extract_strided_slice %52 {offsets = [0, 256], sizes = [1, 256], strides = [1, 1]} : vector<1x512xf32> to vector<1x256xf32>
    %c1_30 = arith.constant 1 : index
    %c0_31 = arith.constant 0 : index
    %c0_32 = arith.constant 0 : index
    %63 = vector.load %arg2[%c1_30, %c0_31, %c0_32] : memref<2x8x256xbf16, #tpu.memory_space<vmem>>, vector<1x8x256xbf16>
    %64 = vector.shape_cast %63 : vector<1x8x256xbf16> to vector<8x256xbf16>
    %65 = arith.extf %64 : vector<8x256xbf16> to vector<8x256xf32>
    %66 = vector.broadcast %62 : vector<1x256xf32> to vector<8x256xf32>
    %67 = arith.mulf %66, %65 : vector<8x256xf32>
    %c1_33 = arith.constant 1 : index
    %c0_34 = arith.constant 0 : index
    %c0_35 = arith.constant 0 : index
    %68 = vector.load %arg8[%c1_33, %c0_34, %c0_35] : memref<2x8x256xf32, #tpu.memory_space<vmem>>, vector<1x8x256xf32>
    %69 = vector.shape_cast %68 : vector<1x8x256xf32> to vector<8x256xf32>
    %70 = vector.shape_cast %67 : vector<8x256xf32> to vector<1x8x256xf32>
    tpu.vector_store %arg8[%c1_33, %c0_34, %c0_35], %70 {strides = array<i32>} : memref<2x8x256xf32, #tpu.memory_space<vmem>>, vector<1x8x256xf32>,
    return
  }
  func.func @transform_0(%arg0: i32) -> (i32, i32, i32) {
    %c0_i32 = arith.constant 0 : i32
    %c0_i32_0 = arith.constant 0 : i32
    %c0_i32_1 = arith.constant 0 : i32
    return %arg0, %c0_i32, %c0_i32_0 : i32, i32, i32
  }
  func.func @transform_1(%arg0: i32) -> (i32, i32, i32) {
    %c0_i32 = arith.constant 0 : i32
    %c0_i32_0 = arith.constant 0 : i32
    %c0_i32_1 = arith.constant 0 : i32
    return %arg0, %c0_i32, %c0_i32_0 : i32, i32, i32
  }
  func.func @transform_2(%arg0: i32) -> (i32, i32) {
    %c0_i32 = arith.constant 0 : i32
    %c0_i32_0 = arith.constant 0 : i32
    %c0_i32_1 = arith.constant 0 : i32
    return %c0_i32, %c0_i32_0 : i32, i32
  }
  func.func @transform_3(%arg0: i32) -> (i32, i32) {
    %c0_i32 = arith.constant 0 : i32
    %c0_i32_0 = arith.constant 0 : i32
    %c0_i32_1 = arith.constant 0 : i32
    return %c0_i32, %c0_i32_0 : i32, i32
  }
  func.func @transform_4(%arg0: i32) -> (i32, i32) {
    %c0_i32 = arith.constant 0 : i32
    %c0_i32_0 = arith.constant 0 : i32
    %c0_i32_1 = arith.constant 0 : i32
    return %c0_i32, %c0_i32_0 : i32, i32
  }
  func.func @transform_5(%arg0: i32) -> (i32, i32) {
    %c0_i32 = arith.constant 0 : i32
    %c0_i32_0 = arith.constant 0 : i32
    %c0_i32_1 = arith.constant 0 : i32
    return %c0_i32, %c0_i32_0 : i32, i32
  }
  func.func @transform_6(%arg0: i32) -> (i32, i32) {
    %c0_i32 = arith.constant 0 : i32
    %c0_i32_0 = arith.constant 0 : i32
    %c0_i32_1 = arith.constant 0 : i32
    return %c0_i32, %c0_i32_0 : i32, i32
  }
  func.func @transform_7(%arg0: i32) -> (i32, i32, i32) {
    %c0_i32 = arith.constant 0 : i32
    %c0_i32_0 = arith.constant 0 : i32
    %c0_i32_1 = arith.constant 0 : i32
    return %arg0, %c0_i32, %c0_i32_0 : i32, i32, i32
  }
}

</mosaic_0001>

<bundles_post_ra>
// kernel: tpu_custom_call.1
= control target key start
LH: loop header
LB: loop body
LE: loop exit
PB: predicated region body
PF: predicated region fallthrough
CT: control target
= control target key end

     0   :  { %s1754_s0 = inlined_call_operand.hbm [shape: bf16[4,8,256], index: 0, kind: input, shape index: {}]   ;;  %s1755_s1 = inlined_call_operand.hbm [shape: bf16[4,8,256], index: 1, kind: input, shape index: {}]   ;;  %s1756_s2 = inlined_call_operand.vmem [shape: bf16[16,8], index: 2, kind: input, shape index: {}]   ;;  %s1757_s3 = inlined_call_operand.vmem [shape: bf16[16,8], index: 3, kind: input, shape index: {}]   ;;  %s1758_s4 = inlined_call_operand.hbm [shape: bf16[9,16], index: 4, kind: input, shape index: {}]   ;;  %s1759_s5 = inlined_call_operand.vmem [shape: bf16[9,512], index: 5, kind: input, shape index: {}]   ;;  %s1760_s6 = inlined_call_operand.<no memory space> [shape: f32[1,1], index: 6, kind: input, shape index: {}]   ;;  %s1761_s7 = inlined_call_operand.hbm [shape: f32[4,8,256], index: 7, kind: output, shape index: {}]  }
   0x1   :  { %1766 = sst [smem:[#allocation15_spill]] %s1754_s0 }
   0x2   :  { %1767 = sst [smem:[#allocation16_spill]] %s1758_s4 }
   0x3   :  { %12 = sst [smem:[#allocation2]] %s1760_s6 }
   0x4   :  { %13 = vsyncpa [#allocation4], 0 }
   0x5   :  { %15 = vsyncpa [#allocation4 + $0x1], 0 }
   0x6   :  { %16 = vsyncpa [#allocation7], 0 }
   0x7   :  { %18 = vsyncpa [#allocation7 + $0x1], 0 }
   0x8   :  { %19 = vsyncpa [#allocation5], 0 }
   0x9   :  { %21 = vsyncpa [#allocation5 + $0x1], 0  ;;  %s1433_s26 = smov 0   ;;  %s1435_s27 = smov 0  }
   0xa   :  { %s1437_s28 = smov 0   ;;  %s1439_s29 = smov 0  }
   0xb LB: > { %s1454_s6 = sadd.s32 4294967295, %s1374_s29   ;;  %s1062_s30 = sadd.s32 4294967294, %s1374_s29   ;;  %s1374_s29 = sphi %s1439_s29, %s1789_s29   ;;  %s1370_s28 = sphi %s1437_s28, %s1788_s28   ;;  %s1366_s27 = sphi %s1435_s27, %s1787_s27   ;;  %s1362_s26 = sphi %s1433_s26, %s1786_s26  }
   0xc   : > { %p47_p0 = scmp.ne.s32.totalorder %s1366_s27, %s1362_s26  ;;  %p1762_p1 = scmp.eq.s32.totalorder %s1454_s6, 0 }
   0xd   : > { %p208_p3 = scmp.eq.s32.totalorder %s1062_s30, 1  ;;  %p1063_p5 = scmp.ge.s32.totalorder %s1374_s29, 1 }
   0xe   : > { %p1463_p4 = por %p1762_p1, %p47_p0  ;;  %p215_p7 = scmp.lt.s32.totalorder %s1374_s29, 3 }
   0xf   : > { %p1468_p6 = por %p208_p3, %p47_p0  ;;  %s1376_s11 = smov [#allocation8]  }
  0x10   : > { %s1768_s8 = scalar_select %p1463_p4, 1, 0 }
  0x11   : > { %s1769_s9 = scalar_select %p1468_p6, 1, 0 }
  0x12   : > { %p1473_p8 = pnand %p1063_p5, %p215_p7  ;;  %s233_s12 = sshll.u32 %s1376_s11, 4  ;;  %s234_s12 = int_to_ptr.vmem [resolvable:$true] %s233_s12 }
  0x13   : > { %s1487_s14 = sadd.s32 1, %s1374_s29   ;;  %s34_s15 = sadd.s32 1, %s1370_s28 }
  0x14   : > { %p1131_p9 = pneg %p1473_p8  ;;  %s31_s16 = ssub.s32 %s1374_s29, %s1487_s14 }
  0x15   : > { %s1231_s17 = scalar_lea.vmem %s234_s12, 128  ;;  %p1239_p5 = scmp.lt.s32.totalorder %s234_s12, %s234_s12 }
  0x16   : > { %p1482_p11 = pnand %p1131_p9, %p1762_p1  ;;  %p1232_p13 = scmp.ne.s32.totalorder %s234_s12, %s1231_s17 }
  0x17   : > { %p1240_p7 = scmp.lt.s32.totalorder %s1231_s17, %s1231_s17 }
  0x18   : > { %p1222_p12 = pneg %p1482_p11 }
  0x19   : > { %p1241_p10 = por %p1240_p7, %p1239_p5 }
  0x1a   : > { %p1234_p0 = pnand %p1232_p13, %p1222_p12 }
  0x1c   : > { %p1235_p3 = pneg %p1234_p0 }
  0x1e   : > { %p1242_p2 = pnand %p1241_p10, %p1235_p3 }
  0x20   : > { %1245 = shalt.err (!%p1242_p2)
}
  0x21   : > { %s1377_s18 = smov 64   ;;  %s1378_s19 = smov 4  }
  0x22   : > { %s1772_s4 = sld [smem:[#allocation16_spill]]  ;;  %p32_p9 = scmp.eq.s32.totalorder %s31_s16, 0 }
  0x23   : > { %p41_p10 = scmp.ne.s32.totalorder %s1370_s28, %s1366_s27  ;;  %p42_p2 = scmp.eq.s32.totalorder %s1374_s29, 0 }
  0x24   : > { %p1147_p12 = scmp.lt.s32.totalorder %s1374_s29, 2  ;;  %p1774_p0 = scmp.eq.s32.totalorder %s1454_s6, 1 }
  0x25   : > { %s1504_s22 = scalar_select %p32_p9, %s1370_s28, %s34_s15  }
  0x26   : > { %p43_p13 = por %p42_p2, %p41_p10  ;;  %p1508_p3 = por %p1774_p0, %p41_p10 }
  0x27   : > { %1773 = sst [smem:[#allocation14_spill]] %s1504_s22  ;;  %s253_s24 = sand.u32 1, %s1370_s28  }
  0x28   : > { %1134 = dma.hbm_to_vmem [thread:$0]  (!%p1482_p11), %s1772_s4, 128, %s234_s12, [#allocation7], %s1377_s18, %s1377_s18, %s1378_s19  }
  0x29   : > { %s1775_s23 = scalar_select %p1508_p3, 1, 0 }
  0x2a   : > { %s1763_s25 = sshll.u32 %s1374_s29, 8  ;;  %s1514_s30 = sshll.u32 %s253_s24, 4 }
  0x2b   : > { %s1776_s0 = sld [smem:[#allocation15_spill]]  ;;  %s257_s15 = scalar_lea.vmem [#allocation3], %s1514_s30 }
  0x2c   : > { %s265_s16 = sshll.u32 %s257_s15, 4  ;;  %p1524_p11 = pnand %p1147_p12, %p43_p13  ;;  %s1528_s16 = int_to_ptr.vmem [resolvable:$true] %s265_s16 }
  0x2d   : > { %s1530_s18 = scalar_lea.sflag [#allocation4], %s253_s24 }
  0x2e   : > { %p1248_p7 = pneg %p1524_p11 }
  0x31   : > { %s1521_s12 = scalar_lea.hbm %s1776_s0, %s1763_s25  ;;  %s1251_s11 = scalar_lea.hbm %s1776_s0, 512 }
  0x32   : > { %s1246_s19 = scalar_lea.hbm %s1521_s12, 256  ;;  %p1252_p2 = scmp.lt.s32.totalorder %s1521_s12, %s1776_s0 }
  0x33   : > { %p1247_p5 = scmp.ne.s32.totalorder %s1521_s12, %s1246_s19  ;;  %p1253_p12 = scmp.lt.s32.totalorder %s1251_s11, %s1246_s19 }
  0x35   : > { %p1249_p9 = pnand %p1248_p7, %p1247_p5  ;;  %p1254_p13 = por %p1253_p12, %p1252_p2 }
  0x37   : > { %p1250_p10 = pneg %p1249_p9 }
  0x39   : > { %p1255_p0 = pnand %p1254_p13, %p1250_p10 }
  0x3b   : > { %1258 = shalt.err (!%p1255_p0)
}
  0x3c   : > { %s1259_s24 = scalar_lea.vmem %s1528_s16, 256  ;;  %s1379_s20 = smov [#allocation3]  }
  0x3d   : > { %p1260_p1 = scmp.ne.s32.totalorder %s1528_s16, %s1259_s24  ;;  %s1264_s21 = sshll.u32 %s1379_s20, 4  ;;  %s1265_s21 = int_to_ptr.vmem [resolvable:$false] %s1264_s21 }
  0x3e   : > { %s1266_s25 = scalar_lea.vmem %s1265_s21, 512  ;;  %p1267_p6 = scmp.lt.s32.totalorder %s1528_s16, %s1265_s21 }
  0x3f   : > { %p1262_p5 = pnand %p1260_p1, %p1248_p7  ;;  %p1268_p3 = scmp.lt.s32.totalorder %s1266_s25, %s1259_s24 }
  0x41   : > { %p1263_p9 = pneg %p1262_p5  ;;  %p1269_p4 = por %p1268_p3, %p1267_p6 }
  0x43   : > { %p1270_p2 = pnand %p1269_p4, %p1263_p9 }
  0x45   : > { %1273 = shalt.err (!%p1270_p2)
}
  0x46   : > { %s1380_s19 = smov 128   ;;  %s1381_s11 = smov 8  }
  0x47   : > { %1138 = dma.hbm_to_vmem [thread:$0]  (!%p1524_p11), %s1521_s12, 256, %s1528_s16, %s1530_s18, %s1380_s19, %s1380_s19, %s1381_s11  }
  0x48   : > { %s1778_s13 = sshll.u32 %s1374_s29, 8  ;;  %s279_s20 = scalar_lea.vmem [#allocation6], %s1514_s30 }
  0x49   : > { %s1565_s24 = scalar_lea.hbm %s1755_s1, %s1778_s13  ;;  %s287_s21 = sshll.u32 %s279_s20, 4  ;;  %s1569_s21 = int_to_ptr.vmem [resolvable:$true] %s287_s21 }
  0x4a   : > { %s275_s0 = sand.u32 1, %s1374_s29   ;;  %s1274_s22 = scalar_lea.hbm %s1565_s24, 256 }
  0x4b   : > { %s276_s4 = scalar_lea.sflag [#allocation7], %s275_s0  ;;  %p1275_p1 = scmp.ne.s32.totalorder %s1565_s24, %s1274_s22 }
  0x4c   : > { %s1279_s18 = scalar_lea.hbm %s1755_s1, 512  ;;  %p1280_p3 = scmp.lt.s32.totalorder %s1565_s24, %s1755_s1 }
  0x4d   : > { %p1277_p4 = pnand %p1275_p1, %p1248_p7  ;;  %p1281_p10 = scmp.lt.s32.totalorder %s1279_s18, %s1274_s22 }
  0x4f   : > { %p1278_p6 = pneg %p1277_p4  ;;  %p1282_p12 = por %p1281_p10, %p1280_p3 }
  0x51   : > { %p1283_p13 = pnand %p1282_p12, %p1278_p6 }
  0x53   : > { %1286 = shalt.err (!%p1283_p13)
}
  0x54   : > { %s1287_s0 = scalar_lea.vmem %s1569_s21, 256  ;;  %s1382_s30 = smov [#allocation6]  }
  0x55   : > { %p1288_p0 = scmp.ne.s32.totalorder %s1569_s21, %s1287_s0  ;;  %s1292_s15 = sshll.u32 %s1382_s30, 4  ;;  %s1293_s15 = int_to_ptr.vmem [resolvable:$false] %s1292_s15 }
  0x56   : > { %s1294_s20 = scalar_lea.vmem %s1293_s15, 512  ;;  %p1295_p2 = scmp.lt.s32.totalorder %s1569_s21, %s1293_s15 }
  0x57   : > { %p1290_p5 = pnand %p1288_p0, %p1248_p7  ;;  %p1296_p1 = scmp.lt.s32.totalorder %s1294_s20, %s1287_s0 }
  0x59   : > { %p1291_p9 = pneg %p1290_p5  ;;  %p1297_p4 = por %p1296_p1, %p1295_p2 }
  0x5b   : > { %p1298_p3 = pnand %p1297_p4, %p1291_p9 }
  0x5d   : > { %1301 = shalt.err (!%p1298_p3)
}
  0x5e   : > { %1141 = dma.hbm_to_vmem [thread:$0]  (!%p1524_p11), %s1565_s24, 256, %s1569_s21, %s276_s4, %s1380_s19, %s1380_s19, %s1381_s11  }
  0x5f   : > { %299 = sbr.rel (%p1473_p8) target bundleno = 852 (0x354), region = 48  ;;  %s1599_s22 = sand.u32 (!%p1473_p8), 1, %s1366_s27  }
  0x60   : > { %s1075_s12 = sshll.u32 (!%p1473_p8), %s1599_s22, 4  ;;  %s302_s16 = scalar_lea.sflag (!%p1473_p8), [#allocation4], %s1599_s22 }
  0x61   : > { %s305_s18 = scalar_lea.vmem (!%p1473_p8), [#allocation3], %s1075_s12  ;;  %p1779_p7 = scmp.ne.s32.totalorder (!%p1473_p8), %s1768_s8, 0 }
  0x64   : > { %1345 = dma.done.wait (%p1779_p7), %s302_s16, 256  }
  0x65   : > { %1347 = vsyncadd (%p1779_p7), %s302_s16, 4294967040  ;;  %s310_s4 = sand.u32 1, %s1454_s6   ;;  %s314_s10 = scalar_lea.vmem [#allocation6], %s1075_s12 }
  0x66   : > { %s311_s17 = scalar_lea.sflag [#allocation7], %s310_s4 }
  0x67   : > { %1349 = dma.done.wait (%p1779_p7), %s311_s17, 256  }
  0x68   : > { %1351 = vsyncadd (%p1779_p7), %s311_s17, 4294967040  ;;  %p1780_p8 = scmp.eq.s32.totalorder %s1454_s6, 0 }
  0x6a   : > { %1353 = dma.done.wait (%p1780_p8), [#allocation7], 128   ;;  %p1781_p11 = pmov %p1780_p8 }
  0x6b   : > { %v1383_v0 = vmov 0   ;;  %v1616_v1 = vld [vmem:[%s314_s10] sm:$0xff]  ;;  %vm397_vm0 = vcmask 1043456   ;;  %v1618_v2 = vld [vmem:[%s314_s10 + $0x8] sm:$0xff]  ;;  %vm393_vm1 = vcmask 64512   ;;  %vm621_vm2 = vcmask 130048  }
  0x6c   : > { %1355 = vsyncadd (%p1781_p11), [#allocation7], 4294967168  ;;  %442 = vmatprep.mubr.bf16.mxu0 %v1383_v0  ;;  %485 = vmatprep.mubr.bf16.mxu1 %v1383_v0  ;;  %v1086_v3 = vcombine.high %v1616_v1, %v1616_v1  ;;  %v1088_v4 = vcombine.high %v1618_v2, %v1618_v2  ;;  %v358_v5 = vld [vmem:[%s305_s18] sm:$0xff]  ;;  %v1085_v6 = vcombine.low %v1616_v1, %v1616_v1  ;;  %v1079_v9 = vld [vmem:[%s305_s18 + $0x8] sm:$0xff]  ;;  %s1384_s30 = smov 112   ;;  %s1385_s12 = smov 16  }
  0x6d   : > { %v1087_v7 = vcombine.low %v1618_v2, %v1618_v2  ;;  %v1081_v8 = vcombine.high %v358_v5, %v358_v5  ;;  %v1080_v10 = vcombine.low %v358_v5, %v358_v5  ;;  %v1083_v11 = vcombine.high %v1079_v9, %v1079_v9  ;;  %v1197_v15 = vld [vmem:[%s1757_s3] sm:$0xff]   ;;  %v712_v57 = vld [vmem:[%s1759_s5 + $0x8] sm:$0xff]  ;;  %s1386_s4 = smov 1   ;;  %s1387_s17 = smov 127  }
  0x6e   : > { %1090 = vmatprep.subr.msk.bf16.mxu0 %vm397_vm0, %v1086_v3  ;;  %1092 = vmatprep.subr.msk.bf16.mxu1 %vm397_vm0, %v1088_v4  ;;  %v1082_v12 = vcombine.low %v1079_v9, %v1079_v9  ;;  %v399_v13 = vsel %vm397_vm0, %v1085_v6, 0  ;;  %v1202_v18 = vld [vmem:[%s1756_s2] sm:$0xff]   ;;  %v717_v59 = vunpack.c.l.bf16 %v712_v57  ;;  %v718_v5 = vunpack.c.h.bf16 %v712_v57  ;;  %s882_s10 = sld [smem:[#allocation2]]  ;;  %s1078_s8 = sshll.u32 %s1599_s22, 5 }
  0x6f   : > { %v405_v14 = vsel %vm397_vm0, %v1087_v7, 0  ;;  %425 = vmatpush1.bf16.msra.mxu0 %v399_v13  ;;  %v505_v16 = vsel %vm397_vm0, %v1080_v10, 0  ;;  %v1203_v55 = vld [vmem:[#allocation8] sm:$0x1f]   ;;  %v714_v13 = vld [vmem:[%s1759_s5 + $0x18] sm:$0x11] }
  0x70   : > { %468 = vmatpush1.bf16.msra.mxu1 %v405_v14  ;;  %1095 = vmatprep.subr.msk.bf16.mxu0 %vm397_vm0, %v1081_v8  ;;  %v511_v17 = vsel %vm397_vm0, %v1082_v12, 0  ;;  %v711_v56 = vld [vmem:[%s1759_s5] sm:$0xff]  ;;  %v713_v8 = vld [vmem:[%s1759_s5 + $0x10] sm:$0x11]  ;;  %vm784_vm3 = vcmask 916480   ;;  %vm799_vm4 = vcmask 1041408  }
  0x71   : > { %1097 = vmatprep.subr.msk.bf16.mxu1 %vm397_vm0, %v1083_v11  ;;  %v715_v58 = vunpack.c.l.bf16 %v711_v56  ;;  %v716_v60 = vunpack.c.h.bf16 %v711_v56  ;;  %v719_v10 = vunpack.c.l.bf16 %v713_v8  ;;  %v720_v11 = vunpack.c.h.bf16 %v713_v8  ;;  %s1120_s19 = sshll.u32 %s1454_s6, 9  ;;  %s353_s11 = scalar_lea.vmem [#allocation9], %s1078_s8 }
  0x72   : > { %1091 = vmatmul.mubr.msk.bf16.vlgmr.msra.gmra.mxu0 %vm393_vm1, %v1197_v15  ;;  %vm833_vm5 = vcmask 7168   ;;  %vm862_vm6 = vcmask 1039360   ;;  %s957_s24 = sshll.u32 %s353_s11, 4  ;;  %s1708_s25 = scalar_lea.hbm %s1761_s7, %s1120_s19  ;;  %s1710_s24 = int_to_ptr.vmem [resolvable:$true] %s957_s24 }
  0x73   : > { %1093 = vmatmul.mubr.msk.bf16.vlgmr.msra.gmra.mxu1 %vm393_vm1, %v1197_v15  ;;  %531 = vmatpush1.bf16.msra.mxu0 %v505_v16  ;;  %v721_v15 = vunpack.c.l.bf16 %v714_v13  ;;  %v722_v16 = vunpack.c.h.bf16 %v714_v13  ;;  %s943_s6 = scalar_lea.sflag [#allocation5], %s1599_s22  ;;  %s1302_s0 = scalar_lea.vmem %s1710_s24, 512 }
  0x74   : > { %574 = vmatpush1.bf16.msra.mxu1 %v511_v17  ;;  %548 = vmatprep.mubr.bf16.mxu0 %v1383_v0  ;;  %p1303_p6 = scmp.ne.s32.totalorder %s1710_s24, %s1302_s0  ;;  %p1782_p10 = scmp.ne.s32.totalorder %s1775_s23, 0 }
  0x75   : > { %591 = vmatprep.mubr.bf16.mxu1 %v1383_v0 }
  0x76   : > { %p1304_p12 = pnand %p1303_p6, %p1782_p10 }
  0x78   : > { %p1305_p13 = pneg %p1304_p12 }
  0x7a   : > { %1096 = vmatmul.mubr.msk.bf16.vlgmr.msra.gmra.mxu0 %vm393_vm1, %v1202_v18 }
  0x7b   : > { %1098 = vmatmul.mubr.msk.bf16.vlgmr.msra.gmra.mxu1 %vm393_vm1, %v1202_v18  ;;  %657 = vmatprep.mubr.bf16.mxu0 %v1383_v0 }
  0x7c   : > { %700 = vmatprep.mubr.bf16.mxu1 %v1383_v0 }
 0x132   : > { %v444_v19 = vpop.f32.mrf.mxu0 }
 0x133   : > { %v487_v20 = vpop.f32.mrf.mxu1 }
 0x134   : > { %v446_v21 = vpop.f32.mrf.mxu0 }
 0x135   : > { %v489_v22 = vpop.f32.mrf.mxu1 }
 0x136   : > { %v448_v23 = vpop.f32.mrf.mxu0 }
 0x137   : > { %v491_v24 = vpop.f32.mrf.mxu1 }
 0x138   : > { %v450_v25 = vpop.f32.mrf.mxu0 }
 0x139   : > { %v493_v26 = vpop.f32.mrf.mxu1 }
 0x13a   : > { %v550_v27 = vpop.f32.mrf.mxu0 }
 0x13b   : > { %v593_v28 = vpop.f32.mrf.mxu1  ;;  %v551_v37 = vadd.f32 %v550_v27, %v444_v19 }
 0x13c   : > { %v552_v29 = vpop.f32.mrf.mxu0  ;;  %v594_v38 = vadd.f32 %v593_v28, %v487_v20 }
 0x13d   : > { %v595_v30 = vpop.f32.mrf.mxu1  ;;  %v553_v33 = vadd.f32 %v552_v29, %v446_v21  ;;  %v602_v49 = vmax.f32 %v551_v37, 0.0 }
 0x13e   : > { %v554_v31 = vpop.f32.mrf.mxu0  ;;  %v596_v34 = vadd.f32 %v595_v30, %v489_v22  ;;  %v604_v50 = vmax.f32 %v594_v38, 0.0 }
 0x13f   : > { %v597_v32 = vpop.f32.mrf.mxu1  ;;  %v555_v35 = vadd.f32 %v554_v31, %v448_v23  ;;  %v603_v45 = vmax.f32 %v553_v33, 0.0 }
 0x140   : > { %v598_v36 = vadd.f32 %v597_v32, %v491_v24  ;;  %v556_v39 = vpop.f32.mrf.mxu0  ;;  %v605_v46 = vmax.f32 %v596_v34, 0.0 }
 0x141   : > { %v599_v40 = vpop.f32.mrf.mxu1  ;;  %v557_v41 = vadd.f32 %v556_v39, %v450_v25  ;;  %v606_v43 = vmax.f32 %v555_v35, 0.0 }
 0x142   : > { %v600_v42 = vadd.f32 %v599_v40, %v493_v26  ;;  %v608_v44 = vmax.f32 %v598_v36, 0.0 }
 0x143   : > { %v607_v47 = vmax.f32 %v557_v41, 0.0  ;;  %v612_v53 = vpack.c.bf16 %v606_v43, %v602_v49 }
 0x144   : > { %v609_v48 = vmax.f32 %v600_v42, 0.0  ;;  %v614_v54 = vpack.c.bf16 %v608_v44, %v604_v50 }
 0x145   : > { %v613_v51 = vpack.c.bf16 %v607_v47, %v603_v45 }
 0x146   : > { %v615_v52 = vpack.c.bf16 %v609_v48, %v605_v46 }
 0x147   : > { %639 = vmatprep.subr.bf16.mxu0 %v613_v51 }
 0x148   : > { %682 = vmatprep.subr.bf16.mxu1 %v615_v52  ;;  %640 = vmatpush1.bf16.msra.mxu0 %v612_v53 }
 0x149   : > { %683 = vmatpush1.bf16.msra.mxu1 %v614_v54 }
 0x14b   : > { %1100 = vmatmul.mubr.msk.bf16.vlgmr.msra.gmra.mxu0 %vm621_vm2, %v1203_v55 }
 0x14c   : > { %1101 = vmatmul.mubr.msk.bf16.vlgmr.msra.gmra.mxu1 %vm621_vm2, %v1203_v55 }
 0x20b   : > { %v659_v61 = vpop.f32.mrf.mxu0 }
 0x20c   : > { %v702_v62 = vpop.f32.mrf.mxu1  ;;  %v723_v63 = vmul.f32 %v715_v58, %v659_v61 }
 0x20d   : > { %v1650_v0 = vmul.f32 %v717_v59, %v702_v62  ;;  %v661_v3 = vpop.f32.mrf.mxu0 }
 0x20e   : > { %768 = vrot.lane.b32.xlu0 %v723_v63, %s1384_s30  ;;  %v1653_v4 = vmul.f32 %v716_v60, %v661_v3  ;;  %v704_v6 = vpop.f32.mrf.mxu1  ;;  %v752_v32 = vrot.slane %v723_v63, 3 }
 0x20f   : > { %772 = vrot.lane.b32.xlu1 %v1650_v0, %s1384_s30  ;;  %v663_v7 = vpop.f32.mrf.mxu0  ;;  %v1660_v9 = vmul.f32 %v718_v5, %v704_v6  ;;  %v754_v50 = vrot.slane %v1650_v0, 3 }
 0x210   : > { %v706_v12 = vpop.f32.mrf.mxu1  ;;  %v727_v17 = vmul.f32 %v719_v10, %v663_v7  ;;  %v753_v58 = vrot.slane %v1653_v4, 3 }
 0x211   : > { %v665_v14 = vpop.f32.mrf.mxu0  ;;  %v729_v20 = vmul.f32 %v721_v15, %v706_v12  ;;  %v755_v51 = vrot.slane %v1660_v9, 3 }
 0x212   : > { %770 = vrot.lane.b32.xlu0 %v1653_v4, %s1384_s30  ;;  %v728_v18 = vmul.f32 %v720_v11, %v665_v14  ;;  %v708_v19 = vpop.f32.mrf.mxu1 }
 0x213   : > { %738 = vrot.lane.b32.xlu1 %v723_v63, %s1385_s12  ;;  %v730_v21 = vmul.f32 %v722_v16, %v708_v19 }
 0x216   : > { %732 = vrot.lane.b32.xlu0 %v1660_v9, %s1385_s12 }
 0x217   : > { %774 = vrot.lane.b32.xlu1 %v1660_v9, %s1384_s30 }
 0x21a   : > { %776 = vrot.lane.b32.xlu0 %v727_v17, %s1384_s30 }
 0x21b   : > { %778 = vrot.lane.b32.xlu1 %v728_v18, %s1384_s30 }
 0x21e   : > { %780 = vrot.lane.b32.xlu0 %v729_v20, %s1384_s30 }
 0x21f   : > { %782 = vrot.lane.b32.xlu1 %v730_v21, %s1384_s30  ;;  %s1388_s30 = smov [#allocation9]  }
 0x220   : > { %s1306_s15 = sshll.u32 %s1388_s30, 4  ;;  %s1307_s15 = int_to_ptr.vmem [resolvable:$false] %s1306_s15 }
 0x221   : > { %s1308_s20 = scalar_lea.vmem %s1307_s15, 1024  ;;  %p1309_p0 = scmp.lt.s32.totalorder %s1710_s24, %s1307_s15 }
 0x222   : > { %740 = vrot.lane.b32.xlu0 %v1653_v4, %s1385_s12  ;;  %p1310_p5 = scmp.lt.s32.totalorder %s1308_s20, %s1302_s0 }
 0x223   : > { %742 = vrot.lane.b32.xlu1 %v1650_v0, %s1385_s12 }
 0x224   : > { %p1311_p9 = por %p1310_p5, %p1309_p0 }
 0x226   : > { %p1312_p2 = pnand %p1311_p9, %p1305_p13 }
 0x280   : > { %v769_v23 = vpop.permute.xlu0 %768 }
 0x281   : > { %v773_v22 = vpop.permute.xlu1 %772 }
 0x284   : > { %v771_v25 = vpop.permute.xlu0 %770 }
 0x285   : > { %v739_v24 = vpop.permute.xlu1 %738  ;;  %v785_v28 = vsel %vm784_vm3, %v769_v23, %v771_v25  ;;  %v786_v57 = vsel %vm784_vm3, %v771_v25, %v773_v22 }
 0x286   : > { %v800_v34 = vrot.slane %v785_v28, 6  ;;  %v803_v6 = vrot.slane %v786_v57, 6 }
 0x288   : > { %v733_v27 = vpop.permute.xlu0 %732 }
 0x289   : > { %v775_v26 = vpop.permute.xlu1 %774  ;;  %v751_v29 = vsel %vm621_vm2, %v733_v27, %v739_v24 }
 0x28a   : > { %v760_v36 = vadd.f32 %v752_v32, %v751_v29  ;;  %v787_v40 = vsel %vm784_vm3, %v773_v22, %v775_v26  ;;  %v795_v44 = vsel %vm784_vm3, %v775_v26, %v769_v23  ;;  %v883_v29 = vstv %s882_s10 }
 0x28b   : > { %v806_v47 = vrot.slane %v787_v40, 6  ;;  %v809_v53 = vrot.slane %v795_v44, 6 }
 0x28c   : > { %v777_v30 = vpop.permute.xlu0 %776 }
 0x28d   : > { %v779_v31 = vpop.permute.xlu1 %778 }
 0x28e   : > { %v788_v33 = vsel %vm784_vm3, %v777_v30, %v779_v31 }
 0x28f   : > { %v801_v35 = vrot.slane %v788_v33, 6 }
 0x290   : > { %v781_v37 = vpop.permute.xlu0 %780 }
 0x291   : > { %v783_v38 = vpop.permute.xlu1 %782  ;;  %v802_v39 = vsel %vm799_vm4, %v800_v34, %v801_v35  ;;  %v789_v48 = vsel %vm784_vm3, %v779_v31, %v781_v37 }
 0x292   : > { %v790_v41 = vsel %vm784_vm3, %v781_v37, %v783_v38  ;;  %v796_v42 = vsel %vm784_vm3, %v783_v38, %v777_v30  ;;  %v816_v43 = vadd.f32 %v802_v39, %v760_v36  ;;  %v804_v61 = vrot.slane %v789_v48, 6 }
 0x293   : > { %v807_v45 = vrot.slane %v790_v41, 6  ;;  %v810_v46 = vrot.slane %v796_v42, 6 }
 0x294   : > { %827 = vrot.lane.b32.xlu1 %v816_v43, %s1386_s4  ;;  %v741_v49 = vpop.permute.xlu0 %740  ;;  %v805_v7 = vsel %vm799_vm4, %v803_v6, %v804_v61  ;;  %v842_v15 = vrot.slane %v816_v43, 1 }
 0x295   : > { %v743_v52 = vpop.permute.xlu1 %742  ;;  %v744_v54 = vsel %vm621_vm2, %v739_v24, %v741_v49  ;;  %v811_v62 = vsel %vm799_vm4, %v809_v53, %v810_v46  ;;  %v808_v63 = vsel %vm799_vm4, %v806_v47, %v807_v45 }
 0x296   : > { %v745_v55 = vsel %vm621_vm2, %v741_v49, %v743_v52  ;;  %v746_v56 = vsel %vm621_vm2, %v743_v52, %v733_v27  ;;  %v761_v0 = vadd.f32 %v753_v58, %v744_v54 }
 0x297   : > { %v762_v59 = vadd.f32 %v754_v50, %v745_v55  ;;  %v763_v60 = vadd.f32 %v755_v51, %v746_v56  ;;  %v914_v55 = vlaneseq }
 0x298   : > { %v817_v8 = vadd.f32 %v805_v7, %v761_v0 }
 0x299   : > { %v819_v3 = vadd.f32 %v811_v62, %v763_v60  ;;  %v818_v5 = vadd.f32 %v808_v63, %v762_v59  ;;  %v915_v58 = vshrl.u32 %v914_v55, 7  ;;  %v912_v60 = vunpack.c.l.bf16 %v1616_v1 }
 0x29a   : > { %v843_v27 = vrot.slane %v817_v8, 1  ;;  %v928_v62 = vunpack.c.h.bf16 %v1618_v2 }
 0x29b   : > { %821 = vrot.lane.b32.xlu0 %v819_v3, %s1386_s4  ;;  %831 = vrot.lane.b32.xlu1 %v818_v5, %s1386_s4  ;;  %v845_v16 = vrot.slane %v819_v3, 1  ;;  %v844_v28 = vrot.slane %v818_v5, 1  ;;  %v916_v59 = vsub.s32 0, %v915_v58 }
 0x29f   : > { %829 = vrot.lane.b32.xlu0 %v817_v8, %s1386_s4  ;;  %856 = vrot.lane.b32.xlu1 %v817_v8, %s1387_s17 }
 0x2a3   : > { %854 = vrot.lane.b32.xlu0 %v816_v43, %s1387_s17  ;;  %860 = vrot.lane.b32.xlu1 %v819_v3, %s1387_s17 }
 0x2a7   : > { %858 = vrot.lane.b32.xlu0 %v818_v5, %s1387_s17  ;;  %v913_v5 = vunpack.c.h.bf16 %v1616_v1 }
 0x306   : > { %v828_v4 = vpop.permute.xlu1 %827 }
 0x30d   : > { %v822_v9 = vpop.permute.xlu0 %821  ;;  %v832_v10 = vpop.permute.xlu1 %831 }
 0x30e   : > { %v841_v13 = vsel %vm833_vm5, %v822_v9, %v828_v4  ;;  %v836_v14 = vsel %vm833_vm5, %v832_v10, %v822_v9 }
 0x30f   : > { %v850_v19 = vadd.f32 %v842_v15, %v841_v13  ;;  %v853_v20 = vadd.f32 %v845_v16, %v836_v14 }
 0x311   : > { %v830_v11 = vpop.permute.xlu0 %829  ;;  %v857_v12 = vpop.permute.xlu1 %856 }
 0x312   : > { %v834_v23 = vsel %vm833_vm5, %v828_v4, %v830_v11  ;;  %v835_v24 = vsel %vm833_vm5, %v830_v11, %v832_v10  ;;  %v927_v4 = vunpack.c.l.bf16 %v1618_v2 }
 0x313   : > { %v851_v33 = vadd.f32 %v843_v27, %v834_v23  ;;  %v852_v34 = vadd.f32 %v844_v28, %v835_v24 }
 0x315   : > { %v855_v17 = vpop.permute.xlu0 %854  ;;  %v861_v18 = vpop.permute.xlu1 %860 }
 0x316   : > { %v863_v21 = vsel %vm862_vm6, %v855_v17, %v857_v12  ;;  %v868_v22 = vsel %vm862_vm6, %v861_v18, %v855_v17 }
 0x317   : > { %v870_v25 = vrot.slane %v863_v21, 2  ;;  %v873_v26 = vrot.slane %v868_v22, 2 }
 0x319   : > { %v878_v30 = vadd.f32 %v870_v25, %v850_v19  ;;  %v881_v31 = vadd.f32 %v873_v26, %v853_v20  ;;  %v859_v32 = vpop.permute.xlu0 %858 }
 0x31a   : > { %v864_v35 = vsel %vm862_vm6, %v857_v12, %v859_v32  ;;  %v865_v36 = vsel %vm862_vm6, %v859_v32, %v861_v18 }
 0x31b   : > { %v884_v37 = vadd.f32 %v883_v29, %v878_v30  ;;  %v887_v38 = vadd.f32 %v883_v29, %v881_v31  ;;  %v871_v39 = vrot.slane %v864_v35, 2  ;;  %v872_v40 = vrot.slane %v865_v36, 2 }
 0x31d   : > { %v1102_v41 = vmul.f32 -1.442695, %v884_v37  ;;  %v1105_v42 = vmul.f32 -1.442695, %v887_v38  ;;  %v879_v43 = vadd.f32 %v871_v39, %v851_v33  ;;  %v880_v44 = vadd.f32 %v872_v40, %v852_v34 }
 0x31f   : > { %1204 = vpow2.f32 %v1102_v41  ;;  %v885_v45 = vadd.f32 %v883_v29, %v879_v43  ;;  %v886_v46 = vadd.f32 %v883_v29, %v880_v44 }
 0x320   : > { %1206 = vpow2.f32 %v1105_v42 }
 0x321   : > { %v1103_v47 = vmul.f32 -1.442695, %v885_v45  ;;  %v1104_v48 = vmul.f32 -1.442695, %v886_v46 }
 0x323   : > { %1208 = vpow2.f32 %v1103_v47 }
 0x324   : > { %1210 = vpow2.f32 %v1104_v48 }
 0x32c   : > { %v1205_v49 = vpop.eup %1204 }
 0x32d   : > { %v1207_v50 = vpop.eup %1206  ;;  %v900_v51 = vadd.f32 1.0, %v1205_v49 }
 0x32e   : > { %v903_v52 = vadd.f32 1.0, %v1207_v50 }
 0x32f   : > { %1212 = vrcp.f32 %v900_v51 }
 0x330   : > { %v1209_v53 = vpop.eup %1208  ;;  %1214 = vrcp.f32 %v903_v52 }
 0x331   : > { %v1211_v54 = vpop.eup %1210  ;;  %v901_v56 = vadd.f32 1.0, %v1209_v53 }
 0x332   : > { %v902_v57 = vadd.f32 1.0, %v1211_v54 }
 0x333   : > { %1216 = vrcp.f32 %v901_v56 }
 0x334   : > { %1218 = vrcp.f32 %v902_v57 }
 0x33c   : > { %v1213_v61 = vpop.eup %1212 }
 0x33d   : > { %v1215_v63 = vpop.eup %1214  ;;  %v917_v0 = vrot.slane %v1213_v61, %v916_v59 }
 0x33e   : > { %v936_v3 = vrot.slane %v1215_v63, %v916_v59 }
 0x33f   : > { %v922_v6 = vmul.f32 %v917_v0, %v912_v60 }
 0x340   : > { %v1217_v7 = vpop.eup %1216  ;;  %v938_v8 = vmul.f32 %v936_v3, %v928_v62 }
 0x341   : > { %v1219_v9 = vpop.eup %1218  ;;  %v921_v10 = vrot.slane %v1217_v7, %v916_v59  ;;  %924 = vst [vmem:[%s353_s11] sm:$0xff] %v922_v6 }
 0x342   : > { %v932_v11 = vrot.slane %v1219_v9, %v916_v59  ;;  %1108 = vst [vmem:[%s353_s11 + $0x18] sm:$0xff] %v938_v8 }
 0x343   : > { %v923_v12 = vmul.f32 %v921_v10, %v913_v5 }
 0x344   : > { %v937_v1 = vmul.f32 %v932_v11, %v927_v4 }
 0x345   : > { %925 = vst [vmem:[%s353_s11 + $0x8] sm:$0xff] %v923_v12 }
 0x346   : > { %1107 = vst [vmem:[%s353_s11 + $0x10] sm:$0xff] %v937_v1 }
 0x347   : > { %1315 = shalt.err (!%p1312_p2)
}
 0x348   : > { %s1316_s16 = scalar_lea.hbm %s1708_s25, 512  ;;  %s1320_s17 = scalar_lea.hbm %s1761_s7, 1024 }
 0x349   : > { %p1317_p1 = scmp.ne.s32.totalorder %s1708_s25, %s1316_s16  ;;  %p1321_p7 = scmp.lt.s32.totalorder %s1708_s25, %s1761_s7 }
 0x34a   : > { %p1322_p8 = scmp.lt.s32.totalorder %s1320_s17, %s1316_s16 }
 0x34b   : > { %p1318_p4 = pnand %p1317_p1, %p1782_p10 }
 0x34c   : > { %p1323_p11 = por %p1322_p8, %p1321_p7 }
 0x34d   : > { %p1319_p3 = pneg %p1318_p4 }
 0x34f   : > { %p1324_p6 = pnand %p1323_p11, %p1319_p3 }
 0x351   : > { %1327 = shalt.err (!%p1324_p6)
}
 0x352   : > { %s1389_s19 = smov 256  }
 0x353   : > { %1129 = dma.vmem_to_hbm [thread:$0]  (%p1782_p10), %s1710_s24, 512, %s1708_s25, %s943_s6, %s1389_s19, %s1389_s19, %s1385_s12  }
 0x354 PF: > { %s972_s11 = sand.u32 1, %s1362_s26   ;;  %p1783_p12 = scmp.ne.s32.totalorder %s1769_s9, 0 }
 0x355   : > { %p1784_p13 = scmp.ge.s32.totalorder %s1374_s29, 2  ;;  %s973_s21 = scalar_lea.sflag [#allocation5], %s972_s11 }
 0x357   : > { %p1143_p0 = pnand %p1784_p13, %p1783_p12 }
 0x359   : > { %p1144_p5 = pneg %p1143_p0 }
 0x35b   : > { %1357 = dma.done.wait (%p1144_p5), %s973_s21, 512  }
 0x35c   : > { %1359 = vsyncadd (%p1144_p5), %s973_s21, 4294966784  ;;  %s1785_s23 = sld [smem:[#allocation14_spill]]  ;;  %p24_p9 = scmp.ge.s32.totalorder %s1487_s14, 4  }
 0x35d   : > { %s1786_s26 = smov %s1366_s27  ;;  %s1787_s27 = smov %s1370_s28 }
 0x35e   : > { %s1789_s29 = smov %s1487_s14  ;;  %26 = sbr.rel (!%p24_p9) target bundleno = 11 (0xb), region = 113 }
 0x362   : > { %s1788_s28 = smov %s1785_s23 }
 0x363   :  { %978 = vsyncpa [#allocation4], 1 }
 0x364   :  { %980 = vsyncpa [#allocation4 + $0x1], 1 }
 0x365   :  { %981 = vsyncpa [#allocation7], 1 }
 0x366   :  { %983 = vsyncpa [#allocation7 + $0x1], 1 }
 0x367   :  { %984 = vsyncpa [#allocation5], 1 }
 0x368   :  { %986 = vsyncpa [#allocation5 + $0x1], 1 }

</bundles_post_ra>
